<compile_context>
chip_gen: v5e
topology: v5e:2x2
jax: 0.10.0
libtpu: 0.0.40
codegen_flags: <defaults>
</compile_context>

<pallas_src>
import jax
import jax.numpy as jnp
from jax.experimental import pallas as pl
from jax.experimental.pallas import tpu as pltpu


def _mlp_edge_score_kernel(src_ref, dst_ref, h_ref, w1_ref, b1_ref, w2_ref, b2_ref,
                           o_ref):
    te = src_ref.shape[0]          # edges in this tile
    n = h_ref.shape[0]             # number of nodes

    src = src_ref[...]             # (TE, 1) int32
    dst = dst_ref[...]             # (TE, 1) int32
    h = h_ref[...]                 # (N, F)  float32

    # One-hot gather of source / destination node features on the MXU.
    col = jax.lax.broadcasted_iota(jnp.int32, (te, n), 1)
    src_oh = (col == src).astype(jnp.float32)                         # (TE, N)
    dst_oh = (col == dst).astype(jnp.float32)                         # (TE, N)
    h_src = jnp.dot(src_oh, h, preferred_element_type=jnp.float32)    # (TE, F)
    h_dst = jnp.dot(dst_oh, h, preferred_element_type=jnp.float32)    # (TE, F)

    # cat([h_src, h_dst], -1) @ W1 -> one MXU matmul with K = 2*F (merged projections).
    h_cat = jnp.concatenate([h_src, h_dst], axis=-1)                  # (TE, 2F)
    z = jnp.dot(h_cat, w1_ref[...], preferred_element_type=jnp.float32)
    z = jnp.maximum(z + b1_ref[...], 0.0)                             # (TE, F)

    score = jnp.dot(z, w2_ref[...], preferred_element_type=jnp.float32)
    o_ref[...] = (score + b2_ref[...]).astype(o_ref.dtype)            # (TE, 1)


def mlp_predictor_forward(h, src, dst, params, *, edges_per_tile=128):
    """score[e] = W2(relu(W1(cat([h[src_e], h[dst_e]])))) for every edge e."""
    e = int(src.shape[0])
    te = edges_per_tile
    # Pad the edge list to a multiple of the tile size (padded scores are discarded).
    e_pad = te * ((e + te - 1) // te)
    pad = e_pad - e
    src_p = jnp.pad(src.astype(jnp.int32), (0, pad)).reshape(e_pad, 1)
    dst_p = jnp.pad(dst.astype(jnp.int32), (0, pad)).reshape(e_pad, 1)

    w1, b1, w2, b2 = params["w1"], params["b1"], params["w2"], params["b2"]

    def full(a):
        return pl.BlockSpec(a.shape, lambda i: (0,) * a.ndim, memory_space=pltpu.VMEM)

    edge_spec = pl.BlockSpec((te, 1), lambda i: (i, 0), memory_space=pltpu.VMEM)

    out = pl.pallas_call(
        _mlp_edge_score_kernel,
        out_shape=jax.ShapeDtypeStruct((e_pad, 1), jnp.float32),
        grid=(e_pad // te,),
        in_specs=[edge_spec, edge_spec,
                  full(h), full(w1), full(b1), full(w2), full(b2)],
        out_specs=pl.BlockSpec((te, 1), lambda i: (i, 0), memory_space=pltpu.VMEM),
        compiler_params=pltpu.CompilerParams(dimension_semantics=("parallel",)),
    )(src_p, dst_p, h, w1, b1, w2, b2)

    return out[:e, 0]


def _reference(h, src, dst, params):
    h_cat = jnp.concatenate([h[src], h[dst]], axis=1)
    z = jnp.maximum(jnp.dot(h_cat, params["w1"]) + params["b1"], 0.0)
    s = jnp.dot(z, params["w2"]) + params["b2"]
    return s[:, 0]


if __name__ == "__main__":
    key = jax.random.PRNGKey(0)
    k_src, k_dst, k_h, k_w1, k_b1, k_w2, k_b2 = jax.random.split(key, 7)

    N_NODES = 64     # nodes in the synthetic graph
    H_FEATS = 32     # node embedding dim (h_feats)
    N_EDGES = 256    # edges to score

    # Deterministic synthetic graph: explicit edge-index arrays (replaces the DGL graph).
    src = jax.random.randint(k_src, (N_EDGES,), 0, N_NODES, dtype=jnp.int32)
    dst = jax.random.randint(k_dst, (N_EDGES,), 0, N_NODES, dtype=jnp.int32)
    h = jax.random.normal(k_h, (N_NODES, H_FEATS), dtype=jnp.float32)

    # Deterministic parameters for W1: Linear(2*h_feats, h_feats), W2: Linear(h_feats, 1).
    s1 = 1.0 / jnp.sqrt(2.0 * H_FEATS)
    s2 = 1.0 / jnp.sqrt(1.0 * H_FEATS)
    params = {
        "w1": jax.random.normal(k_w1, (2 * H_FEATS, H_FEATS), jnp.float32) * s1,
        "b1": jax.random.normal(k_b1, (1, H_FEATS), jnp.float32) * s1,
        "w2": jax.random.normal(k_w2, (H_FEATS, 1), jnp.float32) * s2,
        "b2": jax.random.normal(k_b2, (1, 1), jnp.float32) * s2,
    }

    scores = mlp_predictor_forward(h, src, dst, params)
    scores = jax.block_until_ready(scores)

    ref = _reference(h, src, dst, params)
    assert scores.shape == (N_EDGES,)
    assert jnp.allclose(scores, ref, atol=1e-4, rtol=1e-4), float(
        jnp.max(jnp.abs(scores - ref)))

    print("KERNEL_OK")
</pallas_src>

<mosaic_0001>
module attributes {stable_mosaic.version = 11 : i64} {
  func.func @_mlp_edge_score_kernel(%arg0: i32, %arg1: memref<128x1xi32, #tpu.memory_space<vmem>>, %arg2: memref<128x1xi32, #tpu.memory_space<vmem>>, %arg3: memref<64x32xf32, #tpu.memory_space<vmem>>, %arg4: memref<64x32xf32, #tpu.memory_space<vmem>>, %arg5: memref<1x32xf32, #tpu.memory_space<vmem>>, %arg6: memref<32x1xf32, #tpu.memory_space<vmem>>, %arg7: memref<1x1xf32, #tpu.memory_space<vmem>>, %arg8: memref<128x1xf32, #tpu.memory_space<vmem>>) attributes {dimension_semantics = [#tpu.dimension_semantics<parallel>], iteration_bounds = array<i64: 2>, scalar_prefetch = 0 : i64, scratch_operands = 0 : i64, tpu.core_type = #tpu.core_type<tc>, window_params = [{transform_indices = @transform_0, window_bounds = array<i64: 128, 1>}, {transform_indices = @transform_1, window_bounds = array<i64: 128, 1>}, {pipeline_mode = #tpu.pipeline_mode<synchronous>, transform_indices = @transform_2, window_bounds = array<i64: 64, 32>}, {pipeline_mode = #tpu.pipeline_mode<synchronous>, transform_indices = @transform_3, window_bounds = array<i64: 64, 32>}, {pipeline_mode = #tpu.pipeline_mode<synchronous>, transform_indices = @transform_4, window_bounds = array<i64: 1, 32>}, {pipeline_mode = #tpu.pipeline_mode<synchronous>, transform_indices = @transform_5, window_bounds = array<i64: 32, 1>}, {pipeline_mode = #tpu.pipeline_mode<synchronous>, transform_indices = @transform_6, window_bounds = array<i64: 1, 1>}, {transform_indices = @transform_7, window_bounds = array<i64: 128, 1>}]} {
    %c0 = arith.constant 0 : index
    %c0_0 = arith.constant 0 : index
    %0 = vector.load %arg1[%c0, %c0_0] : memref<128x1xi32, #tpu.memory_space<vmem>>, vector<128x1xi32>
    %c0_1 = arith.constant 0 : index
    %c0_2 = arith.constant 0 : index
    %1 = vector.load %arg2[%c0_1, %c0_2] : memref<128x1xi32, #tpu.memory_space<vmem>>, vector<128x1xi32>
    %c0_3 = arith.constant 0 : index
    %c0_4 = arith.constant 0 : index
    %2 = vector.load %arg3[%c0_3, %c0_4] : memref<64x32xf32, #tpu.memory_space<vmem>>, vector<64x32xf32>
    %3 = tpu.iota {dimensions = array<i32: 1>} : vector<128x64xi32>
    %4 = vector.broadcast %0 : vector<128x1xi32> to vector<128x64xi32>
    %5 = arith.cmpi eq, %3, %4 : vector<128x64xi32>
    %6 = arith.extui %5 : vector<128x64xi1> to vector<128x64xi32>
    %7 = arith.sitofp %6 : vector<128x64xi32> to vector<128x64xf32>
    %8 = vector.broadcast %1 : vector<128x1xi32> to vector<128x64xi32>
    %9 = arith.cmpi eq, %3, %8 : vector<128x64xi32>
    %10 = arith.extui %9 : vector<128x64xi1> to vector<128x64xi32>
    %11 = arith.sitofp %10 : vector<128x64xi32> to vector<128x64xf32>
    %cst = arith.constant dense<0.000000e+00> : vector<128x32xf32>
    %12 = tpu.matmul %7, %2, %cst {dimension_numbers = #tpu.dot_dimension_numbers<[1], [0], [0], [1], [0, 0, 1, 1], [], []>} : vector<128x64xf32>, vector<64x32xf32>, vector<128x32xf32> -> vector<128x32xf32>
    %cst_5 = arith.constant dense<0.000000e+00> : vector<128x32xf32>
    %13 = tpu.matmul %11, %2, %cst_5 {dimension_numbers = #tpu.dot_dimension_numbers<[1], [0], [0], [1], [0, 0, 1, 1], [], []>} : vector<128x64xf32>, vector<64x32xf32>, vector<128x32xf32> -> vector<128x32xf32>
    %14 = tpu.concatenate %12, %13 in 1 : vector<128x32xf32>, vector<128x32xf32> -> vector<128x64xf32>
    %c0_6 = arith.constant 0 : index
    %c0_7 = arith.constant 0 : index
    %15 = vector.load %arg4[%c0_6, %c0_7] : memref<64x32xf32, #tpu.memory_space<vmem>>, vector<64x32xf32>
    %cst_8 = arith.constant dense<0.000000e+00> : vector<128x32xf32>
    %16 = tpu.matmul %14, %15, %cst_8 {dimension_numbers = #tpu.dot_dimension_numbers<[1], [0], [0], [1], [0, 0, 1, 1], [], []>} : vector<128x64xf32>, vector<64x32xf32>, vector<128x32xf32> -> vector<128x32xf32>
    %c0_9 = arith.constant 0 : index
    %c0_10 = arith.constant 0 : index
    %17 = vector.load %arg5[%c0_9, %c0_10] : memref<1x32xf32, #tpu.memory_space<vmem>>, vector<1x32xf32>
    %18 = vector.broadcast %17 : vector<1x32xf32> to vector<128x32xf32>
    %19 = arith.addf %16, %18 : vector<128x32xf32>
    %cst_11 = arith.constant 0.000000e+00 : f32
    %20 = vector.broadcast %cst_11 : f32 to vector<128x32xf32>
    %21 = arith.maximumf %19, %20 : vector<128x32xf32>
    %c0_12 = arith.constant 0 : index
    %c0_13 = arith.constant 0 : index
    %22 = vector.load %arg6[%c0_12, %c0_13] : memref<32x1xf32, #tpu.memory_space<vmem>>, vector<32x1xf32>
    %cst_14 = arith.constant dense<0.000000e+00> : vector<128x1xf32>
    %23 = tpu.matmul %21, %22, %cst_14 {dimension_numbers = #tpu.dot_dimension_numbers<[1], [0], [0], [1], [0, 0, 1, 1], [], []>} : vector<128x32xf32>, vector<32x1xf32>, vector<128x1xf32> -> vector<128x1xf32>
    %c0_15 = arith.constant 0 : index
    %c0_16 = arith.constant 0 : index
    %24 = vector.load %arg7[%c0_15, %c0_16] : memref<1x1xf32, #tpu.memory_space<vmem>>, vector<1x1xf32>
    %25 = vector.broadcast %24 : vector<1x1xf32> to vector<128x1xf32>
    %26 = arith.addf %23, %25 : vector<128x1xf32>
    %c0_17 = arith.constant 0 : index
    %c0_18 = arith.constant 0 : index
    %27 = vector.load %arg8[%c0_17, %c0_18] : memref<128x1xf32, #tpu.memory_space<vmem>>, vector<128x1xf32>
    tpu.vector_store %arg8[%c0_17, %c0_18], %26 {strides = array<i32>} : memref<128x1xf32, #tpu.memory_space<vmem>>, vector<128x1xf32>,
    return
  }
  func.func @transform_0(%arg0: i32) -> (i32, i32) {
    %c0_i32 = arith.constant 0 : i32
    %c0_i32_0 = arith.constant 0 : i32
    return %arg0, %c0_i32 : i32, i32
  }
  func.func @transform_1(%arg0: i32) -> (i32, i32) {
    %c0_i32 = arith.constant 0 : i32
    %c0_i32_0 = arith.constant 0 : i32
    return %arg0, %c0_i32 : i32, i32
  }
  func.func @transform_2(%arg0: i32) -> (i32, i32) {
    %c0_i32 = arith.constant 0 : i32
    %c0_i32_0 = arith.constant 0 : i32
    %c0_i32_1 = arith.constant 0 : i32
    return %c0_i32, %c0_i32_0 : i32, i32
  }
  func.func @transform_3(%arg0: i32) -> (i32, i32) {
    %c0_i32 = arith.constant 0 : i32
    %c0_i32_0 = arith.constant 0 : i32
    %c0_i32_1 = arith.constant 0 : i32
    return %c0_i32, %c0_i32_0 : i32, i32
  }
  func.func @transform_4(%arg0: i32) -> (i32, i32) {
    %c0_i32 = arith.constant 0 : i32
    %c0_i32_0 = arith.constant 0 : i32
    %c0_i32_1 = arith.constant 0 : i32
    return %c0_i32, %c0_i32_0 : i32, i32
  }
  func.func @transform_5(%arg0: i32) -> (i32, i32) {
    %c0_i32 = arith.constant 0 : i32
    %c0_i32_0 = arith.constant 0 : i32
    %c0_i32_1 = arith.constant 0 : i32
    return %c0_i32, %c0_i32_0 : i32, i32
  }
  func.func @transform_6(%arg0: i32) -> (i32, i32) {
    %c0_i32 = arith.constant 0 : i32
    %c0_i32_0 = arith.constant 0 : i32
    %c0_i32_1 = arith.constant 0 : i32
    return %c0_i32, %c0_i32_0 : i32, i32
  }
  func.func @transform_7(%arg0: i32) -> (i32, i32) {
    %c0_i32 = arith.constant 0 : i32
    %c0_i32_0 = arith.constant 0 : i32
    return %arg0, %c0_i32 : i32, i32
  }
}

</mosaic_0001>

<bundles_post_ra>
// kernel: tpu_custom_call.1
= control target key start
LH: loop header
LB: loop body
LE: loop exit
PB: predicated region body
PF: predicated region fallthrough
CT: control target
= control target key end

     0   :  { %s1374_s26 = smov 0   ;;  %s1712_s0 = inlined_call_operand.vmem [shape: s32[256,1], index: 0, kind: input, shape index: {}]   ;;  %s1713_s1 = inlined_call_operand.vmem [shape: s32[256,1], index: 1, kind: input, shape index: {}]   ;;  %s1714_s2 = inlined_call_operand.vmem [shape: f32[64,32], index: 2, kind: input, shape index: {}]   ;;  %s1715_s3 = inlined_call_operand.vmem [shape: f32[64,32], index: 3, kind: input, shape index: {}]   ;;  %s1716_s4 = inlined_call_operand.vmem [shape: f32[1,32], index: 4, kind: input, shape index: {}]   ;;  %s1717_s5 = inlined_call_operand.vmem [shape: f32[32,1], index: 5, kind: input, shape index: {}]   ;;  %s1718_s6 = inlined_call_operand.<no memory space> [shape: f32[1,1], index: 6, kind: input, shape index: {}]   ;;  %s1719_s7 = inlined_call_operand.vmem [shape: f32[256,1], index: 7, kind: output, shape index: {}]  }
   0x1   :  { %v12_v0 = vstv %s1718_s6 }
   0x2   :  { %13 = vst [vmem:[#allocation2] sm:$0x1] %v12_v0 }
   0x3 LB: > { %s1195_s27 = sadd.s32 4294967295, %s1326_s26   ;;  %p1199_p0 = scmp.ge.s32.totalorder %s1326_s26, 1  ;;  %s1326_s26 = sphi %s1374_s26, %s19_s26  }
   0x4   : > { %p251_p1 = scmp.lt.s32.totalorder %s1326_s26, 3 }
   0x6   : > { %p252_p2 = pnand %p1199_p0, %p251_p1 }
   0x7   : > { %s1200_s28 = sshll.u32 (!%p252_p2), %s1195_s27, 4  ;;  %s1330_s29 = smov (!%p252_p2), 32  }
   0x8   : > { %255 = sbr.rel (%p252_p2) target bundleno = 768 (0x300), region = 48  ;;  %p289_p3 = scmp.lt.s32.totalorder (!%p252_p2), %s1200_s28, 31 }
   0xd   : > { %v1328_v1 = vmov 0   ;;  %s1721_s28 = smov (!%p289_p3, %s1200_s28), 31  ;;  %v345_v29 = vld [vmem:[%s1714_s2 + $0x38] sm:$0xff]  ;;  %v344_v30 = vld [vmem:[%s1714_s2 + $0x30] sm:$0xff]  ;;  %v343_v34 = vld [vmem:[%s1714_s2 + $0x28] sm:$0xff]  ;;  %v346_v43 = vlaneseq  ;;  %v1329_v46 = vmov 0.0  }
   0xe   : > { %1317 = vset.pattern.permute.xlu2 %v1328_v1  ;;  %1316 = vset.pattern.permute.xlu1 %v1328_v1  ;;  %s1382_s6 = sshll.u32 %s1721_s28, 3  ;;  %v342_v35 = vld [vmem:[%s1714_s2 + $0x20] sm:$0xff]  ;;  %v341_v36 = vld [vmem:[%s1714_s2 + $0x18] sm:$0xff]  ;;  %v340_v39 = vld [vmem:[%s1714_s2 + $0x10] sm:$0xff]  ;;  %vm540_vm1 = vcmask 523264  }
   0xf   : > { %1315 = vset.pattern.permute.xlu0 %v1328_v1  ;;  %s1388_s8 = scalar_lea.vmem %s1713_s1, %s1382_s6  ;;  %s1397_s11 = scalar_lea.vmem %s1712_s0, %s1382_s6  ;;  %710 = vmatpush.msra.mxu1 %v345_v29  ;;  %v339_v40 = vld [vmem:[%s1714_s2 + $0x8] sm:$0xff]  ;;  %v338_v41 = vld [vmem:[%s1714_s2] sm:$0xff]  ;;  %v1452_v44 = vand.u32 127, %v346_v43 }
  0x10   : > { %v326_v2 = vld [vmem:[%s1388_s8 + $0x20] sm:$0xff]  ;;  %v324_v3 = vld [vmem:[%s1388_s8 + $0x10] sm:$0xff]  ;;  %v325_v5 = vld [vmem:[%s1388_s8 + $0x18] sm:$0xff]  ;;  %597 = vmatpush.msra.mxu0 %v345_v29  ;;  %s1671_s13 = scalar_lea.vmem %s1719_s7, %s1382_s6 }
  0x11   : > { %v322_v4 = vld [vmem:[%s1388_s8] sm:$0xff]  ;;  %457 = vperm.xlu2 %1317, %v326_v2   ;;  %451 = vperm.xlu1 %1316, %v324_v3   ;;  %v323_v7 = vld [vmem:[%s1388_s8 + $0x8] sm:$0xff]  ;;  %v328_v9 = vld [vmem:[%s1388_s8 + $0x30] sm:$0xff] }
  0x12   : > { %445 = vperm.xlu0 %1315, %v322_v4   ;;  %v306_v6 = vld [vmem:[%s1397_s11] sm:$0xff]  ;;  %v307_v8 = vld [vmem:[%s1397_s11 + $0x8] sm:$0xff]  ;;  %v329_v11 = vld [vmem:[%s1388_s8 + $0x38] sm:$0xff]  ;;  %711 = vmatpush.msra.mxu1 %v344_v30 }
  0x13   : > { %v327_v10 = vld [vmem:[%s1388_s8 + $0x28] sm:$0xff]  ;;  %v309_v12 = vld [vmem:[%s1397_s11 + $0x18] sm:$0xff]  ;;  %v308_v13 = vld [vmem:[%s1397_s11 + $0x10] sm:$0xff]  ;;  %598 = vmatpush.msra.mxu0 %v344_v30 }
  0x14   : > { %v310_v14 = vld [vmem:[%s1397_s11 + $0x20] sm:$0xff]  ;;  %v331_v15 = vld [vmem:[%s1388_s8 + $0x48] sm:$0xff]  ;;  %v332_v17 = vld [vmem:[%s1388_s8 + $0x50] sm:$0xff]  ;;  %712 = vmatpush.msra.mxu1 %v343_v34 }
  0x15   : > { %v330_v16 = vld [vmem:[%s1388_s8 + $0x40] sm:$0xff]  ;;  %v312_v18 = vld [vmem:[%s1397_s11 + $0x30] sm:$0xff]  ;;  %v311_v19 = vld [vmem:[%s1397_s11 + $0x28] sm:$0xff]  ;;  %599 = vmatpush.msra.mxu0 %v343_v34 }
  0x16   : > { %v313_v20 = vld [vmem:[%s1397_s11 + $0x38] sm:$0xff]  ;;  %v334_v21 = vld [vmem:[%s1388_s8 + $0x60] sm:$0xff]  ;;  %v335_v23 = vld [vmem:[%s1388_s8 + $0x68] sm:$0xff]  ;;  %713 = vmatpush.msra.mxu1 %v342_v35 }
  0x17   : > { %v333_v22 = vld [vmem:[%s1388_s8 + $0x58] sm:$0xff]  ;;  %v315_v24 = vld [vmem:[%s1397_s11 + $0x48] sm:$0xff]  ;;  %v314_v25 = vld [vmem:[%s1397_s11 + $0x40] sm:$0xff]  ;;  %600 = vmatpush.msra.mxu0 %v342_v35 }
  0x18   : > { %v316_v26 = vld [vmem:[%s1397_s11 + $0x50] sm:$0xff]  ;;  %v337_v27 = vld [vmem:[%s1388_s8 + $0x78] sm:$0xff]  ;;  %v318_v31 = vld [vmem:[%s1397_s11 + $0x60] sm:$0xff]  ;;  %714 = vmatpush.msra.mxu1 %v341_v36 }
  0x19   : > { %454 = vperm.xlu1 %1316, %v325_v5   ;;  %349 = vperm.xlu2 %1317, %v306_v6   ;;  %v336_v28 = vld [vmem:[%s1388_s8 + $0x70] sm:$0xff]  ;;  %v319_v32 = vld [vmem:[%s1397_s11 + $0x68] sm:$0xff]  ;;  %v317_v33 = vld [vmem:[%s1397_s11 + $0x58] sm:$0xff] }
  0x1a   : > { %448 = vperm.xlu0 %1315, %v323_v7   ;;  %v321_v37 = vld [vmem:[%s1397_s11 + $0x78] sm:$0xff]  ;;  %v320_v38 = vld [vmem:[%s1397_s11 + $0x70] sm:$0xff]  ;;  %601 = vmatpush.msra.mxu0 %v341_v36 }
  0x1b   : > { %715 = vmatpush.msra.mxu1 %v340_v39 }
  0x1c   : > { %602 = vmatpush.msra.mxu0 %v340_v39 }
  0x1d   : > { %716 = vmatpush.msra.mxu1 %v339_v40 }
  0x1e   : > { %603 = vmatpush.msra.mxu0 %v339_v40 }
  0x1f   : > { %717 = vmatpush.msra.mxu1 %v338_v41 }
  0x20   : > { %604 = vmatpush.msra.mxu0 %v338_v41 }
  0x21   : > { %352 = vperm.xlu1 %1316, %v307_v8   ;;  %463 = vperm.xlu2 %1317, %v328_v9  }
  0x22   : > { %460 = vperm.xlu0 %1315, %v327_v10  }
  0x29   : > { %466 = vperm.xlu1 %1316, %v329_v11   ;;  %358 = vperm.xlu2 %1317, %v309_v12  }
  0x2a   : > { %355 = vperm.xlu0 %1315, %v308_v13  }
  0x31   : > { %361 = vperm.xlu1 %1316, %v310_v14   ;;  %472 = vperm.xlu2 %1317, %v331_v15  }
  0x32   : > { %469 = vperm.xlu0 %1315, %v330_v16  }
  0x39   : > { %475 = vperm.xlu1 %1316, %v332_v17   ;;  %367 = vperm.xlu2 %1317, %v312_v18  }
  0x3a   : > { %364 = vperm.xlu0 %1315, %v311_v19  }
  0x41   : > { %370 = vperm.xlu1 %1316, %v313_v20   ;;  %481 = vperm.xlu2 %1317, %v334_v21  }
  0x42   : > { %478 = vperm.xlu0 %1315, %v333_v22  }
  0x49   : > { %484 = vperm.xlu1 %1316, %v335_v23   ;;  %376 = vperm.xlu2 %1317, %v315_v24  }
  0x4a   : > { %373 = vperm.xlu0 %1315, %v314_v25  }
  0x51   : > { %379 = vperm.xlu1 %1316, %v316_v26   ;;  %490 = vperm.xlu2 %1317, %v337_v27  }
  0x52   : > { %487 = vperm.xlu0 %1315, %v336_v28  }
  0x59   : > { %385 = vperm.xlu1 %1316, %v318_v31   ;;  %388 = vperm.xlu2 %1317, %v319_v32  }
  0x5a   : > { %382 = vperm.xlu0 %1315, %v317_v33  }
  0x61   : > { %394 = vperm.xlu1 %1316, %v321_v37  }
  0x62   : > { %391 = vperm.xlu0 %1315, %v320_v38  }
  0x6b   : > { %v458_v42 = vpop.permute.xlu2 %457 }
  0x6c   : > { %vm496_vm8 = vcmp.eq.s32.totalorder %v1452_v44, %v458_v42 }
  0x6d   : > { %v1226_v0 = vsel %vm496_vm8, 1.0, %v1329_v46 }
  0x73   : > { %v350_v45 = vpop.permute.xlu2 %349 }
  0x74   : > { %vm396_vm0 = vcmp.eq.s32.totalorder %v1452_v44, %v350_v45 }
  0x75   : > { %v1206_v47 = vsel %vm396_vm0, 1.0, %v1329_v46 }
  0x76   : > { %1238 = vmatmul.msk.f32.vlgmr.msra.gmra.mxu0 %vm540_vm1, %v1206_v47 }
  0x7b   : > { %v464_v58 = vpop.permute.xlu2 %463 }
  0x7c   : > { %vm498_vm12 = vcmp.eq.s32.totalorder %v1452_v44, %v464_v58 }
  0x7d   : > { %v1228_v8 = vsel %vm498_vm12, 1.0, %v1329_v46 }
  0x83   : > { %v452_v48 = vpop.permute.xlu1 %451  ;;  %v359_v63 = vpop.permute.xlu2 %358 }
  0x84   : > { %v446_v49 = vpop.permute.xlu0 %445  ;;  %vm494_vm4 = vcmp.eq.s32.totalorder %v1452_v44, %v452_v48  ;;  %vm399_vm9 = vcmp.eq.s32.totalorder %v1452_v44, %v359_v63 }
  0x85   : > { %vm492_vm2 = vcmp.eq.s32.totalorder %v1452_v44, %v446_v49  ;;  %v1224_v55 = vsel %vm494_vm4, 1.0, %v1329_v46  ;;  %v1209_v1 = vsel %vm399_vm9, 1.0, %v1329_v46 }
  0x86   : > { %v1222_v50 = vsel %vm492_vm2, 1.0, %v1329_v46 }
  0x87   : > { %1254 = vmatmul.msk.f32.vlgmr.msra.gmra.mxu1 %vm540_vm1, %v1222_v50 }
  0x8b   : > { %v455_v51 = vpop.permute.xlu1 %454  ;;  %v473_v6 = vpop.permute.xlu2 %472 }
  0x8c   : > { %v449_v52 = vpop.permute.xlu0 %448  ;;  %vm495_vm6 = vcmp.eq.s32.totalorder %v1452_v44, %v455_v51 }
  0x8d   : > { %vm493_vm3 = vcmp.eq.s32.totalorder %v1452_v44, %v449_v52  ;;  %v1225_v60 = vsel %vm495_vm6, 1.0, %v1329_v46  ;;  %v854_v52 = vld [vmem:[%s1715_s3 + $0x30] sm:$0xff] }
  0x8e   : > { %v1223_v53 = vsel %vm493_vm3, 1.0, %v1329_v46  ;;  %vm501_vm3 = vcmp.eq.s32.totalorder %v1452_v44, %v473_v6 }
  0x8f   : > { %1255 = vmatmul.msk.f32.gmra.mxu1 %vm540_vm1, %v1223_v53  ;;  %v1231_v20 = vsel %vm501_vm3, 1.0, %v1329_v46  ;;  %vm831_vm3 = vcmask 261120  }
  0x93   : > { %v353_v54 = vpop.permute.xlu1 %352  ;;  %v368_v11 = vpop.permute.xlu2 %367 }
  0x94   : > { %v461_v56 = vpop.permute.xlu0 %460  ;;  %vm397_vm5 = vcmp.eq.s32.totalorder %v1452_v44, %v353_v54  ;;  %vm402_vm14 = vcmp.eq.s32.totalorder %v1452_v44, %v368_v11  ;;  %v853_v54 = vld [vmem:[%s1715_s3 + $0x28] sm:$0xff] }
  0x95   : > { %v1207_v57 = vsel %vm397_vm5, 1.0, %v1329_v46  ;;  %vm497_vm10 = vcmp.eq.s32.totalorder %v1452_v44, %v461_v56  ;;  %v1212_v12 = vsel %vm402_vm14, 1.0, %v1329_v46  ;;  %v851_v56 = vld [vmem:[%s1715_s3 + $0x18] sm:$0xff] }
  0x96   : > { %1239 = vmatmul.msk.f32.gmra.mxu0 %vm540_vm1, %v1207_v57  ;;  %v1227_v4 = vsel %vm497_vm10, 1.0, %v1329_v46  ;;  %v850_v57 = vld [vmem:[%s1715_s3 + $0x10] sm:$0xff] }
  0x97   : > { %1256 = vmatmul.msk.f32.gmra.mxu1 %vm540_vm1, %v1224_v55  ;;  %v852_v55 = vld [vmem:[%s1715_s3 + $0x20] sm:$0xff] }
  0x9b   : > { %v467_v62 = vpop.permute.xlu1 %466  ;;  %v482_v16 = vpop.permute.xlu2 %481 }
  0x9c   : > { %v356_v59 = vpop.permute.xlu0 %355  ;;  %vm499_vm15 = vcmp.eq.s32.totalorder %v1452_v44, %v467_v62  ;;  %vm504_vm9 = vcmp.eq.s32.totalorder %v1452_v44, %v482_v16 }
  0x9d   : > { %vm398_vm7 = vcmp.eq.s32.totalorder %v1452_v44, %v356_v59  ;;  %v1229_v13 = vsel %vm499_vm15, 1.0, %v1329_v46  ;;  %v1234_v31 = vsel %vm504_vm9, 1.0, %v1329_v46  ;;  %v849_v59 = vld [vmem:[%s1715_s3 + $0x8] sm:$0xff] }
  0x9e   : > { %v1208_v61 = vsel %vm398_vm7, 1.0, %v1329_v46 }
  0x9f   : > { %1240 = vmatmul.msk.f32.gmra.mxu0 %vm540_vm1, %v1208_v61  ;;  %1257 = vmatmul.msk.f32.gmra.mxu1 %vm540_vm1, %v1225_v60  ;;  %v848_v60 = vld [vmem:[%s1715_s3] sm:$0xff] }
  0xa3   : > { %v362_v3 = vpop.permute.xlu1 %361  ;;  %v377_v23 = vpop.permute.xlu2 %376 }
  0xa4   : > { %v470_v2 = vpop.permute.xlu0 %469  ;;  %vm400_vm11 = vcmp.eq.s32.totalorder %v1452_v44, %v362_v3  ;;  %vm405_vm5 = vcmp.eq.s32.totalorder %v1452_v44, %v377_v23 }
  0xa5   : > { %v1210_v5 = vsel %vm400_vm11, 1.0, %v1329_v46  ;;  %vm500_vm0 = vcmp.eq.s32.totalorder %v1452_v44, %v470_v2  ;;  %v1215_v24 = vsel %vm405_vm5, 1.0, %v1329_v46 }
  0xa6   : > { %v1230_v17 = vsel %vm500_vm0, 1.0, %v1329_v46 }
  0xa7   : > { %1241 = vmatmul.msk.f32.gmra.mxu0 %vm540_vm1, %v1209_v1  ;;  %1258 = vmatmul.msk.f32.gmra.mxu1 %vm540_vm1, %v1226_v0 }
  0xab   : > { %v476_v10 = vpop.permute.xlu1 %475  ;;  %v491_v32 = vpop.permute.xlu2 %490 }
  0xac   : > { %v365_v7 = vpop.permute.xlu0 %364  ;;  %vm502_vm6 = vcmp.eq.s32.totalorder %v1452_v44, %v476_v10  ;;  %vm507_vm15 = vcmp.eq.s32.totalorder %v1452_v44, %v491_v32 }
  0xad   : > { %vm401_vm13 = vcmp.eq.s32.totalorder %v1452_v44, %v365_v7  ;;  %v1232_v25 = vsel %vm502_vm6, 1.0, %v1329_v46  ;;  %v1237_v41 = vsel %vm507_vm15, 1.0, %v1329_v46 }
  0xae   : > { %v1211_v9 = vsel %vm401_vm13, 1.0, %v1329_v46 }
  0xaf   : > { %1242 = vmatmul.msk.f32.gmra.mxu0 %vm540_vm1, %v1210_v5  ;;  %1259 = vmatmul.msk.f32.gmra.mxu1 %vm540_vm1, %v1227_v4 }
  0xb3   : > { %v371_v15 = vpop.permute.xlu1 %370  ;;  %v389_v37 = vpop.permute.xlu2 %388 }
  0xb4   : > { %v479_v14 = vpop.permute.xlu0 %478  ;;  %vm403_vm2 = vcmp.eq.s32.totalorder %v1452_v44, %v371_v15  ;;  %vm409_vm13 = vcmp.eq.s32.totalorder %v1452_v44, %v389_v37  ;;  %v991_v37 = vld [vmem:[%s1717_s5 + $0x10] sm:$0xff] }
  0xb5   : > { %v1213_v18 = vsel %vm403_vm2, 1.0, %v1329_v46  ;;  %vm503_vm7 = vcmp.eq.s32.totalorder %v1452_v44, %v479_v14  ;;  %v1219_v38 = vsel %vm409_vm13, 1.0, %v1329_v46 }
  0xb6   : > { %v1233_v28 = vsel %vm503_vm7, 1.0, %v1329_v46 }
  0xb7   : > { %1243 = vmatmul.msk.f32.gmra.mxu0 %vm540_vm1, %v1211_v9  ;;  %1260 = vmatmul.msk.f32.gmra.mxu1 %vm540_vm1, %v1228_v8 }
  0xbb   : > { %v485_v22 = vpop.permute.xlu1 %484 }
  0xbc   : > { %v374_v19 = vpop.permute.xlu0 %373  ;;  %vm505_vm11 = vcmp.eq.s32.totalorder %v1452_v44, %v485_v22 }
  0xbd   : > { %vm404_vm4 = vcmp.eq.s32.totalorder %v1452_v44, %v374_v19  ;;  %v1235_v35 = vsel %vm505_vm11, 1.0, %v1329_v46 }
  0xbe   : > { %v1214_v21 = vsel %vm404_vm4, 1.0, %v1329_v46 }
  0xbf   : > { %1244 = vmatmul.msk.f32.gmra.mxu0 %vm540_vm1, %v1212_v12  ;;  %1261 = vmatmul.msk.f32.gmra.mxu1 %vm540_vm1, %v1229_v13 }
  0xc3   : > { %v380_v27 = vpop.permute.xlu1 %379 }
  0xc4   : > { %v488_v26 = vpop.permute.xlu0 %487  ;;  %vm406_vm8 = vcmp.eq.s32.totalorder %v1452_v44, %v380_v27 }
  0xc5   : > { %v1216_v29 = vsel %vm406_vm8, 1.0, %v1329_v46  ;;  %vm506_vm14 = vcmp.eq.s32.totalorder %v1452_v44, %v488_v26 }
  0xc6   : > { %v1236_v39 = vsel %vm506_vm14, 1.0, %v1329_v46 }
  0xc7   : > { %1245 = vmatmul.msk.f32.gmra.mxu0 %vm540_vm1, %v1213_v18  ;;  %1262 = vmatmul.msk.f32.gmra.mxu1 %vm540_vm1, %v1230_v17 }
  0xcb   : > { %v386_v34 = vpop.permute.xlu1 %385 }
  0xcc   : > { %v383_v30 = vpop.permute.xlu0 %382  ;;  %vm408_vm12 = vcmp.eq.s32.totalorder %v1452_v44, %v386_v34 }
  0xcd   : > { %vm407_vm10 = vcmp.eq.s32.totalorder %v1452_v44, %v383_v30  ;;  %v1218_v36 = vsel %vm408_vm12, 1.0, %v1329_v46 }
  0xce   : > { %v1217_v33 = vsel %vm407_vm10, 1.0, %v1329_v46 }
  0xcf   : > { %1246 = vmatmul.msk.f32.gmra.mxu0 %vm540_vm1, %v1214_v21  ;;  %1263 = vmatmul.msk.f32.gmra.mxu1 %vm540_vm1, %v1231_v20 }
  0xd3   : > { %v395_v43 = vpop.permute.xlu1 %394 }
  0xd4   : > { %v392_v40 = vpop.permute.xlu0 %391  ;;  %vm411_vm2 = vcmp.eq.s32.totalorder %v1452_v44, %v395_v43 }
  0xd5   : > { %vm410_vm0 = vcmp.eq.s32.totalorder %v1452_v44, %v392_v40  ;;  %v1221_v47 = vsel %vm411_vm2, 1.0, %v1329_v46 }
  0xd6   : > { %v1220_v42 = vsel %vm410_vm0, 1.0, %v1329_v46  ;;  %v855_v46 = vld [vmem:[%s1715_s3 + $0x38] sm:$0xff] }
  0xd7   : > { %1247 = vmatmul.msk.f32.gmra.mxu0 %vm540_vm1, %v1215_v24  ;;  %1264 = vmatmul.msk.f32.gmra.mxu1 %vm540_vm1, %v1232_v25 }
  0xd8   : > { %916 = vmatpush.msra.mxu2 %v855_v46  ;;  %v1633_v46 = vld [vmem:[%s1716_s4] ss:$0 sm:$0xff] }
  0xda   : > { %917 = vmatpush.msra.mxu2 %v854_v52 }
  0xdc   : > { %918 = vmatpush.msra.mxu2 %v853_v54 }
  0xde   : > { %919 = vmatpush.msra.mxu2 %v852_v55 }
  0xdf   : > { %1248 = vmatmul.msk.f32.gmra.mxu0 %vm540_vm1, %v1216_v29  ;;  %1265 = vmatmul.msk.f32.gmra.mxu1 %vm540_vm1, %v1233_v28 }
  0xe0   : > { %920 = vmatpush.msra.mxu2 %v851_v56 }
  0xe2   : > { %921 = vmatpush.msra.mxu2 %v850_v57 }
  0xe4   : > { %922 = vmatpush.msra.mxu2 %v849_v59 }
  0xe6   : > { %923 = vmatpush.msra.mxu2 %v848_v60 }
  0xe7   : > { %1249 = vmatmul.msk.f32.gmra.mxu0 %vm540_vm1, %v1217_v33  ;;  %1266 = vmatmul.msk.f32.gmra.mxu1 %vm540_vm1, %v1234_v31 }
  0xef   : > { %1250 = vmatmul.msk.f32.gmra.mxu0 %vm540_vm1, %v1218_v36  ;;  %1267 = vmatmul.msk.f32.gmra.mxu1 %vm540_vm1, %v1235_v35  ;;  %v992_v36 = vld [vmem:[%s1717_s5 + $0x18] sm:$0xff] }
  0xf0   : > { %1057 = vmatpush.msra.mxu3 %v992_v36  ;;  %v1319_v36 = vld [vmem:[#allocation2] ss:$0 sm:$0xff] }
  0xf2   : > { %1058 = vmatpush.msra.mxu3 %v991_v37 }
  0xf3   : > { %v606_v0 = vpop.f32.mrf.mxu0 }
  0xf7   : > { %1251 = vmatmul.msk.f32.gmra.mxu0 %vm540_vm1, %v1219_v38  ;;  %1268 = vmatmul.msk.f32.gmra.mxu1 %vm540_vm1, %v1236_v39  ;;  %v990_v38 = vld [vmem:[%s1717_s5 + $0x8] sm:$0xff] }
  0xf8   : > { %1059 = vmatpush.msra.mxu3 %v990_v38 }
  0xff   : > { %1252 = vmatmul.msk.f32.gmra.mxu0 %vm540_vm1, %v1220_v42  ;;  %1269 = vmatmul.msk.f32.gmra.mxu1 %vm540_vm1, %v1237_v41  ;;  %v989_v41 = vld [vmem:[%s1717_s5] sm:$0xff] }
 0x100   : > { %1060 = vmatpush.msra.mxu3 %v989_v41 }
 0x104   : > { %v719_v45 = vpop.f32.mrf.mxu1 }
 0x105   : > { %783 = vrot.lane.b32.xlu2 %v719_v45, %s1330_s29 }
 0x107   : > { %1253 = vmatmul.msk.f32.gmra.mxu0 %vm540_vm1, %v1221_v47 }
 0x10c   : > { %v722_v48 = vpop.f32.mrf.mxu1 }
 0x10d   : > { %785 = vrot.lane.b32.xlu0 %v722_v48, %s1330_s29 }
 0x113   : > { %v609_v4 = vpop.f32.mrf.mxu0 }
 0x114   : > { %v725_v49 = vpop.f32.mrf.mxu1 }
 0x115   : > { %787 = vrot.lane.b32.xlu1 %v725_v49, %s1330_s29 }
 0x11c   : > { %v728_v50 = vpop.f32.mrf.mxu1  ;;  %v612_v7 = vpop.f32.mrf.mxu0 }
 0x11d   : > { %789 = vrot.lane.b32.xlu2 %v728_v50, %s1330_s29 }
 0x124   : > { %v731_v51 = vpop.f32.mrf.mxu1  ;;  %v615_v9 = vpop.f32.mrf.mxu0 }
 0x125   : > { %791 = vrot.lane.b32.xlu0 %v731_v51, %s1330_s29 }
 0x12c   : > { %v734_v44 = vpop.f32.mrf.mxu1  ;;  %v618_v13 = vpop.f32.mrf.mxu0 }
 0x12d   : > { %793 = vrot.lane.b32.xlu1 %v734_v44, %s1330_s29 }
 0x134   : > { %v737_v53 = vpop.f32.mrf.mxu1  ;;  %v621_v16 = vpop.f32.mrf.mxu0 }
 0x135   : > { %795 = vrot.lane.b32.xlu2 %v737_v53, %s1330_s29 }
 0x13c   : > { %v740_v58 = vpop.f32.mrf.mxu1  ;;  %v624_v19 = vpop.f32.mrf.mxu0 }
 0x13d   : > { %797 = vrot.lane.b32.xlu0 %v740_v58, %s1330_s29 }
 0x144   : > { %v743_v61 = vpop.f32.mrf.mxu1  ;;  %v627_v22 = vpop.f32.mrf.mxu0 }
 0x145   : > { %799 = vrot.lane.b32.xlu1 %v743_v61, %s1330_s29 }
 0x14c   : > { %v746_v62 = vpop.f32.mrf.mxu1  ;;  %v630_v27 = vpop.f32.mrf.mxu0 }
 0x14d   : > { %801 = vrot.lane.b32.xlu2 %v746_v62, %s1330_s29 }
 0x154   : > { %v749_v63 = vpop.f32.mrf.mxu1  ;;  %v633_v30 = vpop.f32.mrf.mxu0 }
 0x155   : > { %803 = vrot.lane.b32.xlu0 %v749_v63, %s1330_s29 }
 0x15c   : > { %v752_v1 = vpop.f32.mrf.mxu1  ;;  %v636_v33 = vpop.f32.mrf.mxu0 }
 0x15d   : > { %805 = vrot.lane.b32.xlu1 %v752_v1, %s1330_s29 }
 0x15f   : > { %v784_v2 = vpop.permute.xlu2 %783 }
 0x160   : > { %v832_v3 = vsel %vm831_vm3, %v606_v0, %v784_v2 }
 0x161   : > { %1270 = vmatmul.msk.f32.vlgmr.msra.gmra.mxu2 %vm540_vm1, %v832_v3 }
 0x164   : > { %v755_v5 = vpop.f32.mrf.mxu1  ;;  %v639_v39 = vpop.f32.mrf.mxu0 }
 0x165   : > { %807 = vrot.lane.b32.xlu2 %v755_v5, %s1330_s29 }
 0x16c   : > { %v758_v6 = vpop.f32.mrf.mxu1  ;;  %v642_v47 = vpop.f32.mrf.mxu0 }
 0x16d   : > { %809 = vrot.lane.b32.xlu0 %v758_v6, %s1330_s29 }
 0x174   : > { %v761_v8 = vpop.f32.mrf.mxu1  ;;  %v645_v50 = vpop.f32.mrf.mxu0 }
 0x175   : > { %811 = vrot.lane.b32.xlu1 %v761_v8, %s1330_s29 }
 0x177   : > { %v790_v17 = vpop.permute.xlu2 %789 }
 0x178   : > { %v835_v18 = vsel %vm831_vm3, %v615_v9, %v790_v17 }
 0x17c   : > { %v764_v10 = vpop.f32.mrf.mxu1  ;;  %v648_v53 = vpop.f32.mrf.mxu0 }
 0x17d   : > { %813 = vrot.lane.b32.xlu2 %v764_v10, %s1330_s29 }
 0x17f   : > { %v786_v11 = vpop.permute.xlu0 %785 }
 0x180   : > { %v833_v12 = vsel %vm831_vm3, %v609_v4, %v786_v11 }
 0x181   : > { %1271 = vmatmul.msk.f32.gmra.mxu2 %vm540_vm1, %v833_v12 }
 0x184   : > { %v651_v59 = vpop.f32.mrf.mxu0 }
 0x187   : > { %v788_v14 = vpop.permute.xlu1 %787 }
 0x188   : > { %v834_v15 = vsel %vm831_vm3, %v612_v7, %v788_v14 }
 0x189   : > { %1272 = vmatmul.msk.f32.gmra.mxu2 %vm540_vm1, %v834_v15 }
 0x18f   : > { %v796_v25 = vpop.permute.xlu2 %795 }
 0x190   : > { %v838_v26 = vsel %vm831_vm3, %v624_v19, %v796_v25 }
 0x191   : > { %1273 = vmatmul.msk.f32.gmra.mxu2 %vm540_vm1, %v835_v18 }
 0x197   : > { %v792_v20 = vpop.permute.xlu0 %791 }
 0x198   : > { %v836_v21 = vsel %vm831_vm3, %v618_v13, %v792_v20 }
 0x199   : > { %1274 = vmatmul.msk.f32.gmra.mxu2 %vm540_vm1, %v836_v21 }
 0x19f   : > { %v794_v23 = vpop.permute.xlu1 %793 }
 0x1a0   : > { %v837_v24 = vsel %vm831_vm3, %v621_v16, %v794_v23 }
 0x1a1   : > { %1275 = vmatmul.msk.f32.gmra.mxu2 %vm540_vm1, %v837_v24 }
 0x1a7   : > { %v802_v34 = vpop.permute.xlu2 %801 }
 0x1a8   : > { %v841_v35 = vsel %vm831_vm3, %v633_v30, %v802_v34 }
 0x1a9   : > { %1276 = vmatmul.msk.f32.gmra.mxu2 %vm540_vm1, %v838_v26 }
 0x1af   : > { %v798_v28 = vpop.permute.xlu0 %797 }
 0x1b0   : > { %v839_v29 = vsel %vm831_vm3, %v627_v22, %v798_v28 }
 0x1b1   : > { %1277 = vmatmul.msk.f32.gmra.mxu2 %vm540_vm1, %v839_v29 }
 0x1b7   : > { %v800_v31 = vpop.permute.xlu1 %799 }
 0x1b8   : > { %v840_v32 = vsel %vm831_vm3, %v630_v27, %v800_v31 }
 0x1b9   : > { %1278 = vmatmul.msk.f32.gmra.mxu2 %vm540_vm1, %v840_v32 }
 0x1bf   : > { %v808_v48 = vpop.permute.xlu2 %807 }
 0x1c0   : > { %v844_v49 = vsel %vm831_vm3, %v642_v47, %v808_v48 }
 0x1c1   : > { %1279 = vmatmul.msk.f32.gmra.mxu2 %vm540_vm1, %v841_v35 }
 0x1c7   : > { %v804_v40 = vpop.permute.xlu0 %803 }
 0x1c8   : > { %v842_v42 = vsel %vm831_vm3, %v636_v33, %v804_v40 }
 0x1c9   : > { %1280 = vmatmul.msk.f32.gmra.mxu2 %vm540_vm1, %v842_v42 }
 0x1cf   : > { %v806_v43 = vpop.permute.xlu1 %805 }
 0x1d0   : > { %v843_v45 = vsel %vm831_vm3, %v639_v39, %v806_v43 }
 0x1d1   : > { %1281 = vmatmul.msk.f32.gmra.mxu2 %vm540_vm1, %v843_v45 }
 0x1d7   : > { %v814_v58 = vpop.permute.xlu2 %813 }
 0x1d8   : > { %v847_v60 = vsel %vm831_vm3, %v651_v59, %v814_v58 }
 0x1d9   : > { %1282 = vmatmul.msk.f32.gmra.mxu2 %vm540_vm1, %v844_v49 }
 0x1df   : > { %v810_v51 = vpop.permute.xlu0 %809 }
 0x1e0   : > { %v845_v44 = vsel %vm831_vm3, %v645_v50, %v810_v51 }
 0x1e1   : > { %1283 = vmatmul.msk.f32.gmra.mxu2 %vm540_vm1, %v845_v44 }
 0x1e4   : > { %v925_v52 = vpop.f32.mrf.mxu2 }
 0x1e5   : > { %v926_v54 = vadd.f32 %v1633_v46, %v925_v52 }
 0x1e7   : > { %v973_v55 = vmax.f32 %v926_v54, 0.0  ;;  %v812_v56 = vpop.permute.xlu1 %811 }
 0x1e8   : > { %v846_v57 = vsel %vm831_vm3, %v648_v53, %v812_v56 }
 0x1e9   : > { %1284 = vmatmul.msk.f32.gmra.mxu2 %vm540_vm1, %v846_v57  ;;  %1286 = vmatmul.msk.f32.vlgmr.msra.gmra.mxu3 %vm831_vm3, %v973_v55 }
 0x1f1   : > { %1285 = vmatmul.msk.f32.gmra.mxu2 %vm540_vm1, %v847_v60  ;;  %vm1110_vm1 = vcmask 7168  }
 0x204   : > { %v928_v61 = vpop.f32.mrf.mxu2 }
 0x205   : > { %v929_v62 = vadd.f32 %v1633_v46, %v928_v61 }
 0x207   : > { %v974_v63 = vmax.f32 %v929_v62, 0.0 }
 0x209   : > { %1287 = vmatmul.msk.f32.gmra.mxu3 %vm831_vm3, %v974_v63 }
 0x20c   : > { %v931_v0 = vpop.f32.mrf.mxu2 }
 0x20d   : > { %v932_v1 = vadd.f32 %v1633_v46, %v931_v0 }
 0x20f   : > { %v975_v2 = vmax.f32 %v932_v1, 0.0 }
 0x211   : > { %1288 = vmatmul.msk.f32.gmra.mxu3 %vm831_vm3, %v975_v2 }
 0x214   : > { %v934_v3 = vpop.f32.mrf.mxu2 }
 0x215   : > { %v935_v4 = vadd.f32 %v1633_v46, %v934_v3 }
 0x217   : > { %v976_v5 = vmax.f32 %v935_v4, 0.0 }
 0x219   : > { %1289 = vmatmul.msk.f32.gmra.mxu3 %vm831_vm3, %v976_v5 }
 0x21c   : > { %v937_v6 = vpop.f32.mrf.mxu2 }
 0x21d   : > { %v938_v7 = vadd.f32 %v1633_v46, %v937_v6 }
 0x21f   : > { %v977_v8 = vmax.f32 %v938_v7, 0.0 }
 0x221   : > { %1290 = vmatmul.msk.f32.gmra.mxu3 %vm831_vm3, %v977_v8 }
 0x224   : > { %v940_v9 = vpop.f32.mrf.mxu2 }
 0x225   : > { %v941_v10 = vadd.f32 %v1633_v46, %v940_v9 }
 0x227   : > { %v978_v11 = vmax.f32 %v941_v10, 0.0 }
 0x229   : > { %1291 = vmatmul.msk.f32.gmra.mxu3 %vm831_vm3, %v978_v11 }
 0x22c   : > { %v943_v12 = vpop.f32.mrf.mxu2 }
 0x22d   : > { %v944_v13 = vadd.f32 %v1633_v46, %v943_v12 }
 0x22f   : > { %v979_v14 = vmax.f32 %v944_v13, 0.0 }
 0x231   : > { %1292 = vmatmul.msk.f32.gmra.mxu3 %vm831_vm3, %v979_v14 }
 0x234   : > { %v946_v15 = vpop.f32.mrf.mxu2 }
 0x235   : > { %v947_v16 = vadd.f32 %v1633_v46, %v946_v15 }
 0x237   : > { %v980_v17 = vmax.f32 %v947_v16, 0.0 }
 0x239   : > { %1293 = vmatmul.msk.f32.gmra.mxu3 %vm831_vm3, %v980_v17 }
 0x23c   : > { %v949_v18 = vpop.f32.mrf.mxu2 }
 0x23d   : > { %v950_v19 = vadd.f32 %v1633_v46, %v949_v18 }
 0x23f   : > { %v981_v20 = vmax.f32 %v950_v19, 0.0 }
 0x241   : > { %1294 = vmatmul.msk.f32.gmra.mxu3 %vm831_vm3, %v981_v20 }
 0x244   : > { %v952_v21 = vpop.f32.mrf.mxu2 }
 0x245   : > { %v953_v22 = vadd.f32 %v1633_v46, %v952_v21 }
 0x247   : > { %v982_v23 = vmax.f32 %v953_v22, 0.0 }
 0x249   : > { %1295 = vmatmul.msk.f32.gmra.mxu3 %vm831_vm3, %v982_v23 }
 0x24c   : > { %v955_v24 = vpop.f32.mrf.mxu2 }
 0x24d   : > { %v956_v25 = vadd.f32 %v1633_v46, %v955_v24 }
 0x24f   : > { %v983_v26 = vmax.f32 %v956_v25, 0.0 }
 0x251   : > { %1296 = vmatmul.msk.f32.gmra.mxu3 %vm831_vm3, %v983_v26 }
 0x254   : > { %v958_v27 = vpop.f32.mrf.mxu2 }
 0x255   : > { %v959_v28 = vadd.f32 %v1633_v46, %v958_v27 }
 0x257   : > { %v984_v29 = vmax.f32 %v959_v28, 0.0 }
 0x259   : > { %1297 = vmatmul.msk.f32.gmra.mxu3 %vm831_vm3, %v984_v29 }
 0x25c   : > { %v961_v30 = vpop.f32.mrf.mxu2 }
 0x25d   : > { %v962_v31 = vadd.f32 %v1633_v46, %v961_v30 }
 0x25f   : > { %v985_v32 = vmax.f32 %v962_v31, 0.0 }
 0x261   : > { %1298 = vmatmul.msk.f32.gmra.mxu3 %vm831_vm3, %v985_v32 }
 0x264   : > { %v964_v33 = vpop.f32.mrf.mxu2 }
 0x265   : > { %v965_v34 = vadd.f32 %v1633_v46, %v964_v33 }
 0x267   : > { %v986_v35 = vmax.f32 %v965_v34, 0.0 }
 0x269   : > { %1299 = vmatmul.msk.f32.gmra.mxu3 %vm831_vm3, %v986_v35 }
 0x26c   : > { %v967_v37 = vpop.f32.mrf.mxu2  ;;  %v1062_v38 = vpop.f32.mrf.mxu3 }
 0x26d   : > { %v968_v39 = vadd.f32 %v1633_v46, %v967_v37  ;;  %v1063_v40 = vadd.f32 %v1319_v36, %v1062_v38 }
 0x26f   : > { %v987_v41 = vmax.f32 %v968_v39, 0.0  ;;  %1111 = vst.msk [vmem:[%s1671_s13] sm:$0xff] %vm1110_vm1, %v1063_v40 }
 0x271   : > { %1300 = vmatmul.msk.f32.gmra.mxu3 %vm831_vm3, %v987_v41 }
 0x274   : > { %v970_v42 = vpop.f32.mrf.mxu2 }
 0x275   : > { %v971_v43 = vadd.f32 %v1633_v46, %v970_v42 }
 0x277   : > { %v988_v45 = vmax.f32 %v971_v43, 0.0 }
 0x279   : > { %1301 = vmatmul.msk.f32.gmra.mxu3 %vm831_vm3, %v988_v45 }
 0x28c   : > { %v1065_v47 = vpop.f32.mrf.mxu3 }
 0x28d   : > { %v1066_v48 = vadd.f32 %v1319_v36, %v1065_v47 }
 0x28f   : > { %1112 = vst.msk [vmem:[%s1671_s13 + $0x8] sm:$0xff] %vm1110_vm1, %v1066_v48 }
 0x294   : > { %v1068_v49 = vpop.f32.mrf.mxu3 }
 0x295   : > { %v1069_v50 = vadd.f32 %v1319_v36, %v1068_v49 }
 0x297   : > { %1113 = vst.msk [vmem:[%s1671_s13 + $0x10] sm:$0xff] %vm1110_vm1, %v1069_v50 }
 0x29c   : > { %v1071_v51 = vpop.f32.mrf.mxu3 }
 0x29d   : > { %v1072_v44 = vadd.f32 %v1319_v36, %v1071_v51 }
 0x29f   : > { %1114 = vst.msk [vmem:[%s1671_s13 + $0x18] sm:$0xff] %vm1110_vm1, %v1072_v44 }
 0x2a4   : > { %v1074_v46 = vpop.f32.mrf.mxu3 }
 0x2a5   : > { %v1075_v52 = vadd.f32 %v1319_v36, %v1074_v46 }
 0x2a7   : > { %1115 = vst.msk [vmem:[%s1671_s13 + $0x20] sm:$0xff] %vm1110_vm1, %v1075_v52 }
 0x2ac   : > { %v1077_v53 = vpop.f32.mrf.mxu3 }
 0x2ad   : > { %v1078_v54 = vadd.f32 %v1319_v36, %v1077_v53 }
 0x2af   : > { %1116 = vst.msk [vmem:[%s1671_s13 + $0x28] sm:$0xff] %vm1110_vm1, %v1078_v54 }
 0x2b4   : > { %v1080_v55 = vpop.f32.mrf.mxu3 }
 0x2b5   : > { %v1081_v56 = vadd.f32 %v1319_v36, %v1080_v55 }
 0x2b7   : > { %1117 = vst.msk [vmem:[%s1671_s13 + $0x30] sm:$0xff] %vm1110_vm1, %v1081_v56 }
 0x2bc   : > { %v1083_v57 = vpop.f32.mrf.mxu3 }
 0x2bd   : > { %v1084_v58 = vadd.f32 %v1319_v36, %v1083_v57 }
 0x2bf   : > { %1118 = vst.msk [vmem:[%s1671_s13 + $0x38] sm:$0xff] %vm1110_vm1, %v1084_v58 }
 0x2c4   : > { %v1086_v59 = vpop.f32.mrf.mxu3 }
 0x2c5   : > { %v1087_v60 = vadd.f32 %v1319_v36, %v1086_v59 }
 0x2c7   : > { %1119 = vst.msk [vmem:[%s1671_s13 + $0x40] sm:$0xff] %vm1110_vm1, %v1087_v60 }
 0x2cc   : > { %v1089_v61 = vpop.f32.mrf.mxu3 }
 0x2cd   : > { %v1090_v62 = vadd.f32 %v1319_v36, %v1089_v61 }
 0x2cf   : > { %1120 = vst.msk [vmem:[%s1671_s13 + $0x48] sm:$0xff] %vm1110_vm1, %v1090_v62 }
 0x2d4   : > { %v1092_v63 = vpop.f32.mrf.mxu3 }
 0x2d5   : > { %v1093_v0 = vadd.f32 %v1319_v36, %v1092_v63 }
 0x2d7   : > { %1121 = vst.msk [vmem:[%s1671_s13 + $0x50] sm:$0xff] %vm1110_vm1, %v1093_v0 }
 0x2dc   : > { %v1095_v1 = vpop.f32.mrf.mxu3 }
 0x2dd   : > { %v1096_v2 = vadd.f32 %v1319_v36, %v1095_v1 }
 0x2df   : > { %1122 = vst.msk [vmem:[%s1671_s13 + $0x58] sm:$0xff] %vm1110_vm1, %v1096_v2 }
 0x2e4   : > { %v1098_v3 = vpop.f32.mrf.mxu3 }
 0x2e5   : > { %v1099_v4 = vadd.f32 %v1319_v36, %v1098_v3 }
 0x2e7   : > { %1123 = vst.msk [vmem:[%s1671_s13 + $0x60] sm:$0xff] %vm1110_vm1, %v1099_v4 }
 0x2ec   : > { %v1101_v5 = vpop.f32.mrf.mxu3 }
 0x2ed   : > { %v1102_v6 = vadd.f32 %v1319_v36, %v1101_v5 }
 0x2ef   : > { %1124 = vst.msk [vmem:[%s1671_s13 + $0x68] sm:$0xff] %vm1110_vm1, %v1102_v6 }
 0x2f4   : > { %v1104_v7 = vpop.f32.mrf.mxu3 }
 0x2f5   : > { %v1105_v8 = vadd.f32 %v1319_v36, %v1104_v7 }
 0x2f7   : > { %1125 = vst.msk [vmem:[%s1671_s13 + $0x70] sm:$0xff] %vm1110_vm1, %v1105_v8 }
 0x2fc   : > { %v1107_v9 = vpop.f32.mrf.mxu3 }
 0x2fd   : > { %v1108_v10 = vadd.f32 %v1319_v36, %v1107_v9 }
 0x2ff   : > { %1126 = vst.msk [vmem:[%s1671_s13 + $0x78] sm:$0xff] %vm1110_vm1, %v1108_v10 }
 0x300 PF: > { %s19_s26 = sadd.s32 1, %s1326_s26  }
 0x301   : > { %p16_p4 = scmp.ge.s32.totalorder %s19_s26, 4  }
 0x303   :  { %18 = sbr.rel (!%p16_p4) target bundleno = 3 (0x3), region = 81 }

</bundles_post_ra>
